<compile_context>
chip_gen: v7x
topology: tpu7x:2x2x1
jax: 0.10.0
libtpu: 0.0.40
codegen_flags: <defaults>
</compile_context>

<pallas_src>
import jax
import jax.numpy as jnp
from jax import lax
from jax.experimental import pallas as pl
from jax.experimental.pallas import tpu as pltpu

KD = KH = KW = 3
NEG_SLOPE = 0.2
BN_EPS = 1e-5
LANE = 128
MATMUL_DTYPE = jnp.bfloat16  # bf16 operands, f32 accumulation (MXU).


def _conv_stats_kernel(p_ref, w_ref, conv_ref, stats_ref):
    # p_ref    : (TM, K_pad)     bf16 im2col patches (lane-dense)
    # w_ref    : (K_pad, C_pad)  bf16 folded conv weight (tiny, resident)
    # conv_ref : (TM, C_pad)     f32 conv output tile
    # stats_ref: (1, 2, C_pad)   f32 per-tile [sum, sum_of_squares]
    acc = jnp.dot(p_ref[...], w_ref[...], preferred_element_type=jnp.float32)
    conv_ref[...] = acc
    s = jnp.sum(acc, axis=0, keepdims=True)          # (1, C_pad)
    sq = jnp.sum(acc * acc, axis=0, keepdims=True)   # (1, C_pad)
    stats_ref[...] = jnp.concatenate([s, sq], axis=0)[None]


def _bn_lrelu_kernel(conv_ref, scale_ref, shift_ref, out_ref):
    # conv_ref : (TM, C_pad) f32;  scale/shift: (1, C_pad) f32
    y = conv_ref[...] * scale_ref[...] + shift_ref[...]
    out_ref[...] = jnp.where(y >= 0.0, y, NEG_SLOPE * y)


def down_block_3d(x, weight, bias, gamma, beta, *, tm=256):
    """DownBlock3d forward: reflect pad 1, Conv3d 3x3x3 s1, train-mode BN, LeakyReLU(0.2).

    x: (N, Cin, D, H, W) NCDHW, weight: (Cout, Cin, 3, 3, 3).  Returns NCDHW.
    `bias` is accepted for API parity but is mathematically cancelled by the
    BatchNorm mean subtraction, so it is not used.
    """
    del bias  # cancelled by train-mode BatchNorm (see header note)
    N, Cin, D, H, W = x.shape
    Cout = weight.shape[0]
    K = KD * KH * KW * Cin
    K_pad = ((K + LANE - 1) // LANE) * LANE
    C_pad = ((Cout + LANE - 1) // LANE) * LANE
    M = N * D * H * W
    tm = max(8, min(tm, ((M + 7) // 8) * 8))
    num_tiles = pl.cdiv(M, tm)
    M_pad = num_tiles * tm

    # ---- wrapper-side layout prep: reflect pad + lane-dense im2col ----------
    # (For very large Cin this could be replaced by in-kernel halo DMAs +
    #  pltpu.roll; for Cin=4 the (M, 27*Cin) slab is the lane-dense layout.)
    xl = jnp.transpose(x, (0, 2, 3, 4, 1))                       # NDHWC
    xp = jnp.pad(xl, ((0, 0), (1, 1), (1, 1), (1, 1), (0, 0)), mode="reflect")
    slabs = [xp[:, kd:kd + D, kh:kh + H, kw:kw + W, :]
             for kd in range(KD) for kh in range(KH) for kw in range(KW)]
    patches = jnp.concatenate(slabs, axis=-1).reshape(M, K)      # (M, 27*Cin)
    patches = jnp.pad(patches, ((0, M_pad - M), (0, K_pad - K)))
    patches = patches.astype(MATMUL_DTYPE)

    # Weight (Cout, Cin, kD, kH, kW) -> (kD*kH*kW*Cin, Cout), padded to 128x128.
    wl = jnp.transpose(weight, (2, 3, 4, 1, 0)).reshape(K, Cout)
    wl = jnp.pad(wl, ((0, K_pad - K), (0, C_pad - Cout))).astype(MATMUL_DTYPE)

    # ---- pass 1: tiled conv matmul + per-tile BN partial sums ---------------
    conv_slab, part_stats = pl.pallas_call(
        _conv_stats_kernel,
        grid=(num_tiles,),
        in_specs=[
            pl.BlockSpec((tm, K_pad), lambda i: (i, 0)),
            pl.BlockSpec((K_pad, C_pad), lambda i: (0, 0)),
        ],
        out_specs=[
            pl.BlockSpec((tm, C_pad), lambda i: (i, 0)),
            pl.BlockSpec((1, 2, C_pad), lambda i: (i, 0, 0)),
        ],
        out_shape=[
            jax.ShapeDtypeStruct((M_pad, C_pad), jnp.float32),
            jax.ShapeDtypeStruct((num_tiles, 2, C_pad), jnp.float32),
        ],
        compiler_params=pltpu.CompilerParams(
            dimension_semantics=("parallel",)),
    )(patches, wl)

    # ---- global BN statistics (tiny (num_tiles, 2, 128) reduction) ----------
    # Zero-padded rows/channels contribute exactly 0 to the sums; divide by the
    # true element count M so statistics are exact.
    total = jnp.sum(part_stats, axis=0)                          # (2, C_pad)
    mean = total[0] / M
    var = jnp.maximum(total[1] / M - mean * mean, 0.0)           # biased, one-pass
    inv_std = lax.rsqrt(var + BN_EPS)
    gamma_p = jnp.pad(gamma.astype(jnp.float32), (0, C_pad - Cout))
    beta_p = jnp.pad(beta.astype(jnp.float32), (0, C_pad - Cout))
    scale = (gamma_p * inv_std).reshape(1, C_pad)
    shift = (beta_p - mean * gamma_p * inv_std).reshape(1, C_pad)

    # ---- pass 2: normalize + LeakyReLU over lane-dense tiles ----------------
    out_slab = pl.pallas_call(
        _bn_lrelu_kernel,
        grid=(num_tiles,),
        in_specs=[
            pl.BlockSpec((tm, C_pad), lambda i: (i, 0)),
            pl.BlockSpec((1, C_pad), lambda i: (0, 0)),
            pl.BlockSpec((1, C_pad), lambda i: (0, 0)),
        ],
        out_specs=pl.BlockSpec((tm, C_pad), lambda i: (i, 0)),
        out_shape=jax.ShapeDtypeStruct((M_pad, C_pad), jnp.float32),
        compiler_params=pltpu.CompilerParams(
            dimension_semantics=("parallel",)),
    )(conv_slab, scale, shift)

    out = out_slab[:M, :Cout].reshape(N, D, H, W, Cout)
    return jnp.transpose(out, (0, 4, 1, 2, 3))                   # back to NCDHW


def _reference(x, weight, bias, gamma, beta, *, operand_dtype=jnp.float32):
    """Pure-JAX reference of the PyTorch forward (reflect pad, train-mode BN)."""
    xp = jnp.pad(x, ((0, 0), (0, 0), (1, 1), (1, 1), (1, 1)), mode="reflect")
    out = lax.conv_general_dilated(
        xp.astype(operand_dtype), weight.astype(operand_dtype),
        window_strides=(1, 1, 1), padding="VALID",
        dimension_numbers=("NCDHW", "OIDHW", "NCDHW"),
        preferred_element_type=jnp.float32)
    out = out + bias.reshape(1, -1, 1, 1, 1)
    mean = jnp.mean(out, axis=(0, 2, 3, 4), keepdims=True)
    var = jnp.mean((out - mean) ** 2, axis=(0, 2, 3, 4), keepdims=True)
    out = (out - mean) * lax.rsqrt(var + BN_EPS)
    out = out * gamma.reshape(1, -1, 1, 1, 1) + beta.reshape(1, -1, 1, 1, 1)
    return jnp.where(out >= 0.0, out, NEG_SLOPE * out)


if __name__ == "__main__":
    # Small shapes: batch=2, in_features=4, out_features=8, D=4, H=W=8.
    N, Cin, Cout, D, H, W = 2, 4, 8, 4, 8, 8

    key = jax.random.PRNGKey(0)
    kx, kw, kb = jax.random.split(key, 3)

    x = jax.random.normal(kx, (N, Cin, D, H, W), dtype=jnp.float32)

    # Conv3d-style uniform fan-in init; BatchNorm3d affine init.
    fan_in = Cin * KD * KH * KW
    bound = float(fan_in) ** -0.5
    weight = jax.random.uniform(kw, (Cout, Cin, KD, KH, KW),
                                minval=-bound, maxval=bound, dtype=jnp.float32)
    bias = jax.random.uniform(kb, (Cout,), minval=-bound, maxval=bound,
                              dtype=jnp.float32)
    gamma = jnp.ones((Cout,), jnp.float32)
    beta = jnp.zeros((Cout,), jnp.float32)

    fwd = jax.jit(lambda a, w, b, g, be: down_block_3d(a, w, b, g, be, tm=256))
    out = jax.block_until_ready(fwd(x, weight, bias, gamma, beta))
    assert out.shape == (N, Cout, D, H, W)

    # Tight check: reference using the SAME bf16 operand rounding as the kernel
    # (verifies the im2col / tiled two-pass-BN structure exactly).
    ref_tight = _reference(x, weight, bias, gamma, beta, operand_dtype=MATMUL_DTYPE)
    err_tight = float(jnp.max(jnp.abs(out - ref_tight)))
    assert err_tight < 2e-3, f"mismatch vs bf16-operand reference: {err_tight:e}"

    # Sanity check vs the exact f32 PyTorch semantics; the only difference is
    # bf16 rounding of the conv operands.
    ref_f32 = _reference(x, weight, bias, gamma, beta, operand_dtype=jnp.float32)
    err_f32 = float(jnp.max(jnp.abs(out - ref_f32)))
    assert err_f32 < 5e-2, f"mismatch vs f32 reference: {err_f32:e}"

    print("KERNEL_OK")
</pallas_src>

<mosaic_0001>
module attributes {stable_mosaic.version = 11 : i64} {
  func.func @_conv_stats_kernel(%arg0: i32, %arg1: memref<256x128xbf16, #tpu.memory_space<vmem>>, %arg2: memref<128x128xbf16, #tpu.memory_space<vmem>>, %arg3: memref<256x128xf32, #tpu.memory_space<vmem>>, %arg4: memref<1x2x128xf32, #tpu.memory_space<vmem>>) attributes {dimension_semantics = [#tpu.dimension_semantics<parallel>], iteration_bounds = array<i64: 2>, scalar_prefetch = 0 : i64, scratch_operands = 0 : i64, tpu.core_type = #tpu.core_type<tc>, window_params = [{transform_indices = @transform_0, window_bounds = array<i64: 256, 128>}, {pipeline_mode = #tpu.pipeline_mode<synchronous>, transform_indices = @transform_1, window_bounds = array<i64: 128, 128>}, {transform_indices = @transform_2, window_bounds = array<i64: 256, 128>}, {transform_indices = @transform_3, window_bounds = array<i64: 1, 2, 128>}]} {
    %c0 = arith.constant 0 : index
    %c0_0 = arith.constant 0 : index
    %0 = vector.load %arg1[%c0, %c0_0] : memref<256x128xbf16, #tpu.memory_space<vmem>>, vector<256x128xbf16>
    %c0_1 = arith.constant 0 : index
    %c0_2 = arith.constant 0 : index
    %1 = vector.load %arg2[%c0_1, %c0_2] : memref<128x128xbf16, #tpu.memory_space<vmem>>, vector<128x128xbf16>
    %cst = arith.constant dense<0.000000e+00> : vector<256x128xf32>
    %2 = tpu.matmul %0, %1, %cst {dimension_numbers = #tpu.dot_dimension_numbers<[1], [0], [0], [1], [0, 0, 1, 1], [], []>} : vector<256x128xbf16>, vector<128x128xbf16>, vector<256x128xf32> -> vector<256x128xf32>
    %c0_3 = arith.constant 0 : index
    %c0_4 = arith.constant 0 : index
    %3 = vector.load %arg3[%c0_3, %c0_4] : memref<256x128xf32, #tpu.memory_space<vmem>>, vector<256x128xf32>
    tpu.vector_store %arg3[%c0_3, %c0_4], %2 {strides = array<i32>} : memref<256x128xf32, #tpu.memory_space<vmem>>, vector<256x128xf32>,
    %cst_5 = arith.constant dense<0.000000e+00> : vector<128xf32>
    %4 = vector.multi_reduction <add>, %2, %cst_5 [0] : vector<256x128xf32> to vector<128xf32>
    %5 = vector.shape_cast %4 : vector<128xf32> to vector<1x128xf32>
    %6 = arith.mulf %2, %2 : vector<256x128xf32>
    %cst_6 = arith.constant dense<0.000000e+00> : vector<128xf32>
    %7 = vector.multi_reduction <add>, %6, %cst_6 [0] : vector<256x128xf32> to vector<128xf32>
    %8 = vector.shape_cast %7 : vector<128xf32> to vector<1x128xf32>
    %9 = tpu.concatenate %5, %8 in 0 : vector<1x128xf32>, vector<1x128xf32> -> vector<2x128xf32>
    %10 = vector.shape_cast %9 : vector<2x128xf32> to vector<1x2x128xf32>
    %c0_7 = arith.constant 0 : index
    %c0_8 = arith.constant 0 : index
    %c0_9 = arith.constant 0 : index
    %11 = vector.load %arg4[%c0_7, %c0_8, %c0_9] : memref<1x2x128xf32, #tpu.memory_space<vmem>>, vector<1x2x128xf32>
    tpu.vector_store %arg4[%c0_7, %c0_8, %c0_9], %10 {strides = array<i32>} : memref<1x2x128xf32, #tpu.memory_space<vmem>>, vector<1x2x128xf32>,
    return
  }
  func.func @transform_0(%arg0: i32) -> (i32, i32) {
    %c0_i32 = arith.constant 0 : i32
    %c0_i32_0 = arith.constant 0 : i32
    return %arg0, %c0_i32 : i32, i32
  }
  func.func @transform_1(%arg0: i32) -> (i32, i32) {
    %c0_i32 = arith.constant 0 : i32
    %c0_i32_0 = arith.constant 0 : i32
    %c0_i32_1 = arith.constant 0 : i32
    return %c0_i32, %c0_i32_0 : i32, i32
  }
  func.func @transform_2(%arg0: i32) -> (i32, i32) {
    %c0_i32 = arith.constant 0 : i32
    %c0_i32_0 = arith.constant 0 : i32
    return %arg0, %c0_i32 : i32, i32
  }
  func.func @transform_3(%arg0: i32) -> (i32, i32, i32) {
    %c0_i32 = arith.constant 0 : i32
    %c0_i32_0 = arith.constant 0 : i32
    %c0_i32_1 = arith.constant 0 : i32
    return %arg0, %c0_i32, %c0_i32_0 : i32, i32, i32
  }
}

module attributes {stable_mosaic.version = 11 : i64} {
  func.func @_bn_lrelu_kernel(%arg0: i32, %arg1: memref<256x128xf32, #tpu.memory_space<vmem>>, %arg2: memref<1x128xf32, #tpu.memory_space<vmem>>, %arg3: memref<1x128xf32, #tpu.memory_space<vmem>>, %arg4: memref<256x128xf32, #tpu.memory_space<vmem>>) attributes {dimension_semantics = [#tpu.dimension_semantics<parallel>], iteration_bounds = array<i64: 2>, scalar_prefetch = 0 : i64, scratch_operands = 0 : i64, tpu.core_type = #tpu.core_type<tc>, window_params = [{transform_indices = @transform_0, window_bounds = array<i64: 256, 128>}, {pipeline_mode = #tpu.pipeline_mode<synchronous>, transform_indices = @transform_1, window_bounds = array<i64: 1, 128>}, {pipeline_mode = #tpu.pipeline_mode<synchronous>, transform_indices = @transform_2, window_bounds = array<i64: 1, 128>}, {transform_indices = @transform_3, window_bounds = array<i64: 256, 128>}]} {
    %c0 = arith.constant 0 : index
    %c0_0 = arith.constant 0 : index
    %0 = vector.load %arg1[%c0, %c0_0] : memref<256x128xf32, #tpu.memory_space<vmem>>, vector<256x128xf32>
    %c0_1 = arith.constant 0 : index
    %c0_2 = arith.constant 0 : index
    %1 = vector.load %arg2[%c0_1, %c0_2] : memref<1x128xf32, #tpu.memory_space<vmem>>, vector<1x128xf32>
    %2 = vector.broadcast %1 : vector<1x128xf32> to vector<256x128xf32>
    %3 = arith.mulf %0, %2 : vector<256x128xf32>
    %c0_3 = arith.constant 0 : index
    %c0_4 = arith.constant 0 : index
    %4 = vector.load %arg3[%c0_3, %c0_4] : memref<1x128xf32, #tpu.memory_space<vmem>>, vector<1x128xf32>
    %5 = vector.broadcast %4 : vector<1x128xf32> to vector<256x128xf32>
    %6 = arith.addf %3, %5 : vector<256x128xf32>
    %cst = arith.constant 0.000000e+00 : f32
    %7 = vector.broadcast %cst : f32 to vector<256x128xf32>
    %8 = arith.cmpf oge, %6, %7 : vector<256x128xf32>
    %cst_5 = arith.constant 2.000000e-01 : f32
    %9 = vector.broadcast %cst_5 : f32 to vector<256x128xf32>
    %10 = arith.mulf %9, %6 : vector<256x128xf32>
    %11 = arith.select %8, %6, %10 : vector<256x128xi1>, vector<256x128xf32>
    %c0_6 = arith.constant 0 : index
    %c0_7 = arith.constant 0 : index
    %12 = vector.load %arg4[%c0_6, %c0_7] : memref<256x128xf32, #tpu.memory_space<vmem>>, vector<256x128xf32>
    tpu.vector_store %arg4[%c0_6, %c0_7], %11 {strides = array<i32>} : memref<256x128xf32, #tpu.memory_space<vmem>>, vector<256x128xf32>,
    return
  }
  func.func @transform_0(%arg0: i32) -> (i32, i32) {
    %c0_i32 = arith.constant 0 : i32
    %c0_i32_0 = arith.constant 0 : i32
    return %arg0, %c0_i32 : i32, i32
  }
  func.func @transform_1(%arg0: i32) -> (i32, i32) {
    %c0_i32 = arith.constant 0 : i32
    %c0_i32_0 = arith.constant 0 : i32
    %c0_i32_1 = arith.constant 0 : i32
    return %c0_i32, %c0_i32_0 : i32, i32
  }
  func.func @transform_2(%arg0: i32) -> (i32, i32) {
    %c0_i32 = arith.constant 0 : i32
    %c0_i32_0 = arith.constant 0 : i32
    %c0_i32_1 = arith.constant 0 : i32
    return %c0_i32, %c0_i32_0 : i32, i32
  }
  func.func @transform_3(%arg0: i32) -> (i32, i32) {
    %c0_i32 = arith.constant 0 : i32
    %c0_i32_0 = arith.constant 0 : i32
    return %arg0, %c0_i32 : i32, i32
  }
}

</mosaic_0001>

<bundles_post_ra>
// kernel: _lambda_.3
= control target key start
LH: loop header
LB: loop body
LE: loop exit
PB: predicated region body
PF: predicated region fallthrough
CT: control target
= control target key end

     0   :  { %s517_s12 = smov 0   ;;  %s679_s0 = inlined_call_operand.vmem [shape: f32[512,128], index: 0, kind: input, shape index: {}]   ;;  %s680_s1 = inlined_call_operand.vmem [shape: f32[1,128], index: 1, kind: input, shape index: {}]   ;;  %s681_s2 = inlined_call_operand.vmem [shape: f32[1,128], index: 2, kind: input, shape index: {}]   ;;  %s682_s3 = inlined_call_operand.vmem [shape: f32[512,128], index: 3, kind: output, shape index: {}]  }
   0x1 LB: > { %s468_s13 = sadd.s32 4294967295, %s495_s12   ;;  %p472_p0 = scmp.ge.s32.totalorder %s495_s12, 1  ;;  %s495_s12 = sphi %s517_s12, %s13_s12  }
   0x2   : > { %p138_p1 = scmp.lt.s32.totalorder %s495_s12, 3 }
   0x4   : > { %p139_p2 = pnand %p472_p0, %p138_p1 }
   0x5   : > { %s473_s14 = sshll.u32 (!%p139_p2), %s468_s13, 5  ;;  %v531_v0 = vld [vmem:[%s680_s1] ss:$0 sm:$0xff] (!%p139_p2) }
   0x6   : > { %142 = sbr.rel (%p139_p2) target bundleno = 62 (0x3e), region = 32  ;;  %p163_p3 = scmp.lt.s32.totalorder (!%p139_p2), %s473_s14, 63  ;;  %v541_v1 = vld [vmem:[%s681_s2] ss:$0 sm:$0xff] (!%p139_p2) }
   0xd   : > { %s684_s14 = smov (!%p163_p3, %s473_s14), 63 }
   0xe   : > { %s474_s15 = sshll.u32 %s684_s14, 3 }
   0xf   : > { %s536_s20 = scalar_lea.vmem %s679_s0, %s474_s15  ;;  %s569_s25 = scalar_lea.vmem %s682_s3, %s474_s15 }
  0x10   : > { %v174_v2 = vld [vmem:[%s536_s20] sm:$0xff]  ;;  %v175_v3 = vld [vmem:[%s536_s20 + $0x8] sm:$0xff]  ;;  %v176_v4 = vld [vmem:[%s536_s20 + $0x10] sm:$0xff] }
  0x11   : > { %v213_v5 = vmul.f32 %v531_v0, %v174_v2  ;;  %v214_v6 = vmul.f32 %v531_v0, %v175_v3  ;;  %v215_v7 = vmul.f32 %v531_v0, %v176_v4  ;;  %v177_v8 = vld [vmem:[%s536_s20 + $0x18] sm:$0xff]  ;;  %v178_v9 = vld [vmem:[%s536_s20 + $0x20] sm:$0xff]  ;;  %v179_v10 = vld [vmem:[%s536_s20 + $0x28] sm:$0xff] }
  0x12   : > { %v216_v11 = vmul.f32 %v531_v0, %v177_v8  ;;  %v217_v12 = vmul.f32 %v531_v0, %v178_v9  ;;  %v218_v13 = vmul.f32 %v531_v0, %v179_v10  ;;  %v180_v14 = vld [vmem:[%s536_s20 + $0x30] sm:$0xff]  ;;  %v181_v15 = vld [vmem:[%s536_s20 + $0x38] sm:$0xff]  ;;  %v182_v24 = vld [vmem:[%s536_s20 + $0x40] sm:$0xff] }
  0x13   : > { %v252_v16 = vadd.f32 %v541_v1, %v213_v5  ;;  %v253_v17 = vadd.f32 %v541_v1, %v214_v6  ;;  %v254_v18 = vadd.f32 %v541_v1, %v215_v7  ;;  %v219_v19 = vmul.f32 %v531_v0, %v180_v14  ;;  %v183_v32 = vld [vmem:[%s536_s20 + $0x48] sm:$0xff]  ;;  %v184_v33 = vld [vmem:[%s536_s20 + $0x50] sm:$0xff]  ;;  %v185_v34 = vld [vmem:[%s536_s20 + $0x58] sm:$0xff] }
  0x14   : > { %v255_v20 = vadd.f32 %v541_v1, %v216_v11  ;;  %v256_v21 = vadd.f32 %v541_v1, %v217_v12  ;;  %v257_v22 = vadd.f32 %v541_v1, %v218_v13  ;;  %v220_v23 = vmul.f32 %v531_v0, %v181_v15  ;;  %v186_v46 = vld [vmem:[%s536_s20 + $0x60] sm:$0xff]  ;;  %v187_v47 = vld [vmem:[%s536_s20 + $0x68] sm:$0xff]  ;;  %v188_v58 = vld [vmem:[%s536_s20 + $0x70] sm:$0xff] }
  0x15   : > { %vm284_vm0 = vcmp.ge.f32.partialorder %v252_v16, 0.0  ;;  %v316_v25 = vmul.f32 0.2, %v252_v16  ;;  %vm285_vm1 = vcmp.ge.f32.partialorder %v253_v17, 0.0  ;;  %v317_v26 = vmul.f32 0.2, %v253_v17 }
  0x16   : > { %vm286_vm2 = vcmp.ge.f32.partialorder %v254_v18, 0.0  ;;  %v318_v27 = vmul.f32 0.2, %v254_v18  ;;  %vm287_vm3 = vcmp.ge.f32.partialorder %v255_v20, 0.0  ;;  %v319_v28 = vmul.f32 0.2, %v255_v20 }
  0x17   : > { %v348_v29 = vsel %vm284_vm0, %v252_v16, %v316_v25  ;;  %v349_v30 = vsel %vm285_vm1, %v253_v17, %v317_v26  ;;  %vm288_vm4 = vcmp.ge.f32.partialorder %v256_v21, 0.0  ;;  %v320_v31 = vmul.f32 0.2, %v256_v21  ;;  %v189_v59 = vld [vmem:[%s536_s20 + $0x78] sm:$0xff]  ;;  %v190_v6 = vld [vmem:[%s536_s20 + $0x80] sm:$0xff]  ;;  %v191_v7 = vld [vmem:[%s536_s20 + $0x88] sm:$0xff] }
  0x18   : > { %380 = vst [vmem:[%s569_s25] sm:$0xff] %v348_v29  ;;  %381 = vst [vmem:[%s569_s25 + $0x8] sm:$0xff] %v349_v30  ;;  %v350_v35 = vsel %vm286_vm2, %v254_v18, %v318_v27  ;;  %v351_v36 = vsel %vm287_vm3, %v255_v20, %v319_v28  ;;  %vm289_vm5 = vcmp.ge.f32.partialorder %v257_v22, 0.0  ;;  %v321_v37 = vmul.f32 0.2, %v257_v22  ;;  %v192_v12 = vld [vmem:[%s536_s20 + $0x90] sm:$0xff]  ;;  %v193_v13 = vld [vmem:[%s536_s20 + $0x98] sm:$0xff] }
  0x19   : > { %382 = vst [vmem:[%s569_s25 + $0x10] sm:$0xff] %v350_v35  ;;  %383 = vst [vmem:[%s569_s25 + $0x18] sm:$0xff] %v351_v36  ;;  %v352_v38 = vsel %vm288_vm4, %v256_v21, %v320_v31  ;;  %v258_v39 = vadd.f32 %v541_v1, %v219_v19  ;;  %v259_v40 = vadd.f32 %v541_v1, %v220_v23  ;;  %v195_v25 = vld [vmem:[%s536_s20 + $0xa8] sm:$0xff]  ;;  %v196_v36 = vld [vmem:[%s536_s20 + $0xb0] sm:$0xff] }
  0x1a   : > { %v221_v41 = vmul.f32 %v531_v0, %v182_v24  ;;  %384 = vst [vmem:[%s569_s25 + $0x20] sm:$0xff] %v352_v38  ;;  %v353_v42 = vsel %vm289_vm5, %v257_v22, %v321_v37  ;;  %v222_v43 = vmul.f32 %v531_v0, %v183_v32  ;;  %v223_v44 = vmul.f32 %v531_v0, %v184_v33  ;;  %v194_v24 = vld [vmem:[%s536_s20 + $0xa0] sm:$0xff]  ;;  %v197_v37 = vld [vmem:[%s536_s20 + $0xb8] sm:$0xff] }
  0x1b   : > { %v224_v45 = vmul.f32 %v531_v0, %v185_v34  ;;  %385 = vst [vmem:[%s569_s25 + $0x28] sm:$0xff] %v353_v42  ;;  %vm290_vm6 = vcmp.ge.f32.partialorder %v258_v39, 0.0  ;;  %v322_v48 = vmul.f32 0.2, %v258_v39  ;;  %vm291_vm7 = vcmp.ge.f32.partialorder %v259_v40, 0.0 }
  0x1c   : > { %v323_v49 = vmul.f32 0.2, %v259_v40  ;;  %v260_v50 = vadd.f32 %v541_v1, %v221_v41  ;;  %v261_v51 = vadd.f32 %v541_v1, %v222_v43  ;;  %v262_v52 = vadd.f32 %v541_v1, %v223_v44 }
  0x1d   : > { %v263_v53 = vadd.f32 %v541_v1, %v224_v45  ;;  %v354_v54 = vsel %vm290_vm6, %v258_v39, %v322_v48  ;;  %v225_v56 = vmul.f32 %v531_v0, %v186_v46  ;;  %v226_v57 = vmul.f32 %v531_v0, %v187_v47  ;;  %v198_v46 = vld [vmem:[%s536_s20 + $0xc0] sm:$0xff]  ;;  %v199_v47 = vld [vmem:[%s536_s20 + $0xc8] sm:$0xff] }
  0x1e   : > { %v355_v55 = vsel %vm291_vm7, %v259_v40, %v323_v49  ;;  %386 = vst [vmem:[%s569_s25 + $0x30] sm:$0xff] %v354_v54  ;;  %vm292_vm8 = vcmp.ge.f32.partialorder %v260_v50, 0.0  ;;  %v324_v60 = vmul.f32 0.2, %v260_v50  ;;  %vm293_vm9 = vcmp.ge.f32.partialorder %v261_v51, 0.0 }
  0x1f   : > { %387 = vst [vmem:[%s569_s25 + $0x38] sm:$0xff] %v355_v55  ;;  %v325_v61 = vmul.f32 0.2, %v261_v51  ;;  %vm294_vm10 = vcmp.ge.f32.partialorder %v262_v52, 0.0  ;;  %v326_v62 = vmul.f32 0.2, %v262_v52  ;;  %v264_v4 = vadd.f32 %v541_v1, %v225_v56 }
  0x20   : > { %vm295_vm11 = vcmp.ge.f32.partialorder %v263_v53, 0.0  ;;  %v327_v63 = vmul.f32 0.2, %v263_v53  ;;  %v356_v2 = vsel %vm292_vm8, %v260_v50, %v324_v60  ;;  %v265_v5 = vadd.f32 %v541_v1, %v226_v57 }
  0x21   : > { %v357_v3 = vsel %vm293_vm9, %v261_v51, %v325_v61  ;;  %388 = vst [vmem:[%s569_s25 + $0x40] sm:$0xff] %v356_v2  ;;  %v358_v8 = vsel %vm294_vm10, %v262_v52, %v326_v62  ;;  %v227_v10 = vmul.f32 %v531_v0, %v188_v58  ;;  %v228_v11 = vmul.f32 %v531_v0, %v189_v59  ;;  %v200_v52 = vld [vmem:[%s536_s20 + $0xd0] sm:$0xff]  ;;  %v202_v2 = vld [vmem:[%s536_s20 + $0xe0] sm:$0xff] }
  0x22   : > { %389 = vst [vmem:[%s569_s25 + $0x48] sm:$0xff] %v357_v3  ;;  %v359_v9 = vsel %vm295_vm11, %v263_v53, %v327_v63  ;;  %390 = vst [vmem:[%s569_s25 + $0x50] sm:$0xff] %v358_v8  ;;  %vm296_vm12 = vcmp.ge.f32.partialorder %v264_v4, 0.0  ;;  %v328_v14 = vmul.f32 0.2, %v264_v4  ;;  %vm297_vm13 = vcmp.ge.f32.partialorder %v265_v5, 0.0 }
  0x23   : > { %391 = vst [vmem:[%s569_s25 + $0x58] sm:$0xff] %v359_v9  ;;  %v329_v15 = vmul.f32 0.2, %v265_v5  ;;  %v266_v16 = vadd.f32 %v541_v1, %v227_v10  ;;  %v267_v17 = vadd.f32 %v541_v1, %v228_v11  ;;  %v229_v18 = vmul.f32 %v531_v0, %v190_v6  ;;  %v201_v53 = vld [vmem:[%s536_s20 + $0xd8] sm:$0xff]  ;;  %v203_v3 = vld [vmem:[%s536_s20 + $0xe8] sm:$0xff] }
  0x24   : > { %v230_v19 = vmul.f32 %v531_v0, %v191_v7  ;;  %v360_v20 = vsel %vm296_vm12, %v264_v4, %v328_v14  ;;  %v231_v22 = vmul.f32 %v531_v0, %v192_v12  ;;  %v232_v23 = vmul.f32 %v531_v0, %v193_v13  ;;  %v204_v14 = vld [vmem:[%s536_s20 + $0xf0] sm:$0xff] }
  0x25   : > { %v361_v21 = vsel %vm297_vm13, %v265_v5, %v329_v15  ;;  %392 = vst [vmem:[%s569_s25 + $0x60] sm:$0xff] %v360_v20  ;;  %vm298_vm14 = vcmp.ge.f32.partialorder %v266_v16, 0.0  ;;  %v330_v26 = vmul.f32 0.2, %v266_v16  ;;  %vm299_vm15 = vcmp.ge.f32.partialorder %v267_v17, 0.0  ;;  %v205_v15 = vld [vmem:[%s536_s20 + $0xf8] sm:$0xff] }
  0x26   : > { %393 = vst [vmem:[%s569_s25 + $0x68] sm:$0xff] %v361_v21  ;;  %v331_v27 = vmul.f32 0.2, %v267_v17  ;;  %v268_v28 = vadd.f32 %v541_v1, %v229_v18  ;;  %v269_v29 = vadd.f32 %v541_v1, %v230_v19  ;;  %v270_v30 = vadd.f32 %v541_v1, %v231_v22 }
  0x27   : > { %v271_v31 = vadd.f32 %v541_v1, %v232_v23  ;;  %v362_v32 = vsel %vm298_vm14, %v266_v16, %v330_v26  ;;  %v233_v34 = vmul.f32 %v531_v0, %v194_v24  ;;  %v234_v35 = vmul.f32 %v531_v0, %v195_v25 }
  0x28   : > { %v363_v33 = vsel %vm299_vm15, %v267_v17, %v331_v27  ;;  %394 = vst [vmem:[%s569_s25 + $0x70] sm:$0xff] %v362_v32  ;;  %vm300_vm0 = vcmp.ge.f32.partialorder %v268_v28, 0.0  ;;  %v332_v38 = vmul.f32 0.2, %v268_v28  ;;  %vm301_vm1 = vcmp.ge.f32.partialorder %v269_v29, 0.0 }
  0x29   : > { %395 = vst [vmem:[%s569_s25 + $0x78] sm:$0xff] %v363_v33  ;;  %v333_v39 = vmul.f32 0.2, %v269_v29  ;;  %vm302_vm2 = vcmp.ge.f32.partialorder %v270_v30, 0.0  ;;  %v334_v40 = vmul.f32 0.2, %v270_v30  ;;  %v272_v44 = vadd.f32 %v541_v1, %v233_v34 }
  0x2a   : > { %vm303_vm3 = vcmp.ge.f32.partialorder %v271_v31, 0.0  ;;  %v335_v41 = vmul.f32 0.2, %v271_v31  ;;  %v364_v42 = vsel %vm300_vm0, %v268_v28, %v332_v38  ;;  %v273_v45 = vadd.f32 %v541_v1, %v234_v35 }
  0x2b   : > { %v365_v43 = vsel %vm301_vm1, %v269_v29, %v333_v39  ;;  %396 = vst [vmem:[%s569_s25 + $0x80] sm:$0xff] %v364_v42  ;;  %v366_v48 = vsel %vm302_vm2, %v270_v30, %v334_v40  ;;  %v235_v50 = vmul.f32 %v531_v0, %v196_v36  ;;  %v236_v51 = vmul.f32 %v531_v0, %v197_v37 }
  0x2c   : > { %397 = vst [vmem:[%s569_s25 + $0x88] sm:$0xff] %v365_v43  ;;  %v367_v49 = vsel %vm303_vm3, %v271_v31, %v335_v41  ;;  %398 = vst [vmem:[%s569_s25 + $0x90] sm:$0xff] %v366_v48  ;;  %vm304_vm4 = vcmp.ge.f32.partialorder %v272_v44, 0.0  ;;  %v336_v54 = vmul.f32 0.2, %v272_v44  ;;  %vm305_vm5 = vcmp.ge.f32.partialorder %v273_v45, 0.0 }
  0x2d   : > { %399 = vst [vmem:[%s569_s25 + $0x98] sm:$0xff] %v367_v49  ;;  %v337_v55 = vmul.f32 0.2, %v273_v45  ;;  %v274_v56 = vadd.f32 %v541_v1, %v235_v50  ;;  %v275_v57 = vadd.f32 %v541_v1, %v236_v51  ;;  %v237_v58 = vmul.f32 %v531_v0, %v198_v46 }
  0x2e   : > { %v238_v59 = vmul.f32 %v531_v0, %v199_v47  ;;  %v368_v60 = vsel %vm304_vm4, %v272_v44, %v336_v54  ;;  %v239_v62 = vmul.f32 %v531_v0, %v200_v52  ;;  %v240_v63 = vmul.f32 %v531_v0, %v201_v53 }
  0x2f   : > { %v369_v61 = vsel %vm305_vm5, %v273_v45, %v337_v55  ;;  %400 = vst [vmem:[%s569_s25 + $0xa0] sm:$0xff] %v368_v60  ;;  %vm306_vm6 = vcmp.ge.f32.partialorder %v274_v56, 0.0  ;;  %v338_v4 = vmul.f32 0.2, %v274_v56  ;;  %vm307_vm7 = vcmp.ge.f32.partialorder %v275_v57, 0.0 }
  0x30   : > { %401 = vst [vmem:[%s569_s25 + $0xa8] sm:$0xff] %v369_v61  ;;  %v339_v5 = vmul.f32 0.2, %v275_v57  ;;  %v276_v6 = vadd.f32 %v541_v1, %v237_v58  ;;  %v277_v7 = vadd.f32 %v541_v1, %v238_v59  ;;  %v278_v8 = vadd.f32 %v541_v1, %v239_v62 }
  0x31   : > { %v279_v9 = vadd.f32 %v541_v1, %v240_v63  ;;  %v370_v10 = vsel %vm306_vm6, %v274_v56, %v338_v4  ;;  %v241_v12 = vmul.f32 %v531_v0, %v202_v2  ;;  %v242_v13 = vmul.f32 %v531_v0, %v203_v3 }
  0x32   : > { %v371_v11 = vsel %vm307_vm7, %v275_v57, %v339_v5  ;;  %402 = vst [vmem:[%s569_s25 + $0xb0] sm:$0xff] %v370_v10  ;;  %vm308_vm8 = vcmp.ge.f32.partialorder %v276_v6, 0.0  ;;  %v340_v16 = vmul.f32 0.2, %v276_v6  ;;  %vm309_vm9 = vcmp.ge.f32.partialorder %v277_v7, 0.0 }
  0x33   : > { %403 = vst [vmem:[%s569_s25 + $0xb8] sm:$0xff] %v371_v11  ;;  %v341_v17 = vmul.f32 0.2, %v277_v7  ;;  %vm310_vm10 = vcmp.ge.f32.partialorder %v278_v8, 0.0  ;;  %v342_v18 = vmul.f32 0.2, %v278_v8  ;;  %v280_v22 = vadd.f32 %v541_v1, %v241_v12 }
  0x34   : > { %vm311_vm11 = vcmp.ge.f32.partialorder %v279_v9, 0.0  ;;  %v343_v19 = vmul.f32 0.2, %v279_v9  ;;  %v372_v20 = vsel %vm308_vm8, %v276_v6, %v340_v16  ;;  %v281_v23 = vadd.f32 %v541_v1, %v242_v13 }
  0x35   : > { %v373_v21 = vsel %vm309_vm9, %v277_v7, %v341_v17  ;;  %404 = vst [vmem:[%s569_s25 + $0xc0] sm:$0xff] %v372_v20  ;;  %v374_v24 = vsel %vm310_vm10, %v278_v8, %v342_v18  ;;  %v243_v26 = vmul.f32 %v531_v0, %v204_v14  ;;  %v244_v27 = vmul.f32 %v531_v0, %v205_v15 }
  0x36   : > { %405 = vst [vmem:[%s569_s25 + $0xc8] sm:$0xff] %v373_v21  ;;  %v375_v25 = vsel %vm311_vm11, %v279_v9, %v343_v19  ;;  %406 = vst [vmem:[%s569_s25 + $0xd0] sm:$0xff] %v374_v24  ;;  %vm312_vm12 = vcmp.ge.f32.partialorder %v280_v22, 0.0  ;;  %v344_v28 = vmul.f32 0.2, %v280_v22  ;;  %vm313_vm13 = vcmp.ge.f32.partialorder %v281_v23, 0.0 }
  0x37   : > { %407 = vst [vmem:[%s569_s25 + $0xd8] sm:$0xff] %v375_v25  ;;  %v345_v29 = vmul.f32 0.2, %v281_v23  ;;  %v282_v30 = vadd.f32 %v541_v1, %v243_v26  ;;  %v283_v31 = vadd.f32 %v541_v1, %v244_v27 }
  0x38   : > { %v376_v32 = vsel %vm312_vm12, %v280_v22, %v344_v28 }
  0x39   : > { %v377_v33 = vsel %vm313_vm13, %v281_v23, %v345_v29  ;;  %408 = vst [vmem:[%s569_s25 + $0xe0] sm:$0xff] %v376_v32  ;;  %vm314_vm14 = vcmp.ge.f32.partialorder %v282_v30, 0.0  ;;  %v346_v34 = vmul.f32 0.2, %v282_v30  ;;  %vm315_vm15 = vcmp.ge.f32.partialorder %v283_v31, 0.0 }
  0x3a   : > { %409 = vst [vmem:[%s569_s25 + $0xe8] sm:$0xff] %v377_v33  ;;  %v347_v0 = vmul.f32 0.2, %v283_v31 }
  0x3b   : > { %v378_v35 = vsel %vm314_vm14, %v282_v30, %v346_v34 }
  0x3c   : > { %v379_v36 = vsel %vm315_vm15, %v283_v31, %v347_v0  ;;  %410 = vst [vmem:[%s569_s25 + $0xf0] sm:$0xff] %v378_v35 }
  0x3d   : > { %411 = vst [vmem:[%s569_s25 + $0xf8] sm:$0xff] %v379_v36 }
  0x3e PF: > { %s13_s12 = sadd.s32 1, %s495_s12  }
  0x3f   : > { %p10_p4 = scmp.ge.s32.totalorder %s13_s12, 4  }
  0x41   :  { %12 = sbr.rel (!%p10_p4) target bundleno = 1 (0x1), region = 62 }

// kernel: _lambda_.2
= control target key start
LH: loop header
LB: loop body
LE: loop exit
PB: predicated region body
PF: predicated region fallthrough
CT: control target
= control target key end

     0   :  { %s951_s12 = smov 0   ;;  %s1134_s0 = inlined_call_operand.vmem [shape: bf16[512,128], index: 0, kind: input, shape index: {}]   ;;  %s1135_s1 = inlined_call_operand.vmem [shape: bf16[128,128], index: 1, kind: input, shape index: {}]   ;;  %s1136_s2 = inlined_call_operand.vmem [shape: f32[512,128], index: 2, kind: output, shape index: {0}]   ;;  %s1137_s3 = inlined_call_operand.vmem [shape: f32[2,2,128], index: 3, kind: output, shape index: {1}]  }
   0x1 LB: > { %s957_s13 = sadd.s32 4294967295, %s929_s12   ;;  %p771_p0 = scmp.ge.s32.totalorder %s929_s12, 1  ;;  %s929_s12 = sphi %s951_s12, %s14_s12  }
   0x2   : > { %p141_p1 = scmp.lt.s32.totalorder %s929_s12, 3 }
   0x4   : > { %p142_p2 = pnand %p771_p0, %p141_p1 }
   0x5   : > { %v899_v0 = vld [vmem:[%s1135_s1] sm:$0xff] (!%p142_p2)   ;;  %s772_s16 = sshll.u32 (!%p142_p2), %s957_s13, 5  ;;  %v900_v1 = vld [vmem:[%s1135_s1 + $0x8] sm:$0xff] (!%p142_p2)   ;;  %v901_v2 = vld [vmem:[%s1135_s1 + $0x10] sm:$0xff] (!%p142_p2)   ;;  %p181_p4 = scmp.lt.s32.totalorder (!%p142_p2), %s957_s13, 1  ;;  %vm677_vm0 = vcmask (!%p142_p2), 1040384  }
   0x6   : > { %145 = sbr.rel (%p142_p2) target bundleno = 331 (0x14b), region = 28  ;;  %p170_p3 = scmp.lt.s32.totalorder (!%p142_p2), %s772_s16, 63  ;;  %827 = vmatprep.subr.bf16.mxu0 (!%p142_p2), %v899_v0  ;;  %875 = vmatprep.subr.bf16.mxu1 (!%p142_p2), %v899_v0  ;;  %v902_v3 = vld [vmem:[%s1135_s1 + $0x18] sm:$0xff] (!%p142_p2)   ;;  %v903_v5 = vld [vmem:[%s1135_s1 + $0x20] sm:$0xff] (!%p142_p2)   ;;  %v904_v6 = vld [vmem:[%s1135_s1 + $0x28] sm:$0xff] (!%p142_p2)  }
   0x7   : > { %828 = vmatpush3.bf16.msra.mxu0 (!%p142_p2), %v899_v0  ;;  %883 = vmatpush3.bf16.msra.mxu1 (!%p142_p2), %v899_v0  ;;  %v905_v8 = vld [vmem:[%s1135_s1 + $0x30] sm:$0xff] (!%p142_p2)   ;;  %v906_v9 = vld [vmem:[%s1135_s1 + $0x38] sm:$0xff] (!%p142_p2)  }
   0x8   : > { %829 = vmatprep.subr.bf16.mxu0 (!%p142_p2), %v900_v1  ;;  %876 = vmatprep.subr.bf16.mxu1 (!%p142_p2), %v900_v1 }
   0xb   : > { %830 = vmatpush3.bf16.msra.mxu0 (!%p142_p2), %v900_v1  ;;  %884 = vmatpush3.bf16.msra.mxu1 (!%p142_p2), %v900_v1 }
   0xc   : > { %831 = vmatprep.subr.bf16.mxu0 (!%p142_p2), %v901_v2  ;;  %877 = vmatprep.subr.bf16.mxu1 (!%p142_p2), %v901_v2 }
   0xd   : > { %s1139_s16 = smov (!%p170_p3, %s772_s16), 63  ;;  %s1141_s13 = smov (!%p181_p4, %s957_s13), 1 }
   0xe   : > { %s773_s21 = sshll.u32 %s1139_s16, 2  ;;  %s775_s8 = sshll.u32 %s1139_s16, 3 }
   0xf   : > { %s977_s24 = scalar_lea.vmem %s1134_s0, %s773_s21  ;;  %832 = vmatpush3.bf16.msra.mxu0 %v901_v2  ;;  %885 = vmatpush3.bf16.msra.mxu1 %v901_v2  ;;  %s1014_s11 = scalar_lea.vmem %s1136_s2, %s775_s8 }
  0x10   : > { %v907_v4 = vld [vmem:[%s977_s24] sm:$0xff]   ;;  %833 = vmatprep.subr.bf16.mxu0 %v902_v3  ;;  %878 = vmatprep.subr.bf16.mxu1 %v902_v3  ;;  %v908_v10 = vld [vmem:[%s977_s24 + $0x8] sm:$0xff]   ;;  %v909_v12 = vld [vmem:[%s977_s24 + $0x10] sm:$0xff]   ;;  %s776_s14 = sshll.u32 %s1141_s13, 1 }
  0x11   : > { %843 = vmatprep.mubr.bf16.mxu0 %v907_v4  ;;  %v915_v7 = vld [vmem:[%s977_s24 + $0x40] sm:$0xff]   ;;  %v916_v11 = vld [vmem:[%s977_s24 + $0x48] sm:$0xff]   ;;  %v917_v13 = vld [vmem:[%s977_s24 + $0x50] sm:$0xff]   ;;  %s184_s17 = scalar_lea.vmem %s1137_s3, %s776_s14 }
  0x12   : > { %859 = vmatprep.mubr.bf16.mxu1 %v915_v7  ;;  %v910_v14 = vld [vmem:[%s977_s24 + $0x18] sm:$0xff]   ;;  %v911_v16 = vld [vmem:[%s977_s24 + $0x20] sm:$0xff]   ;;  %v912_v18 = vld [vmem:[%s977_s24 + $0x28] sm:$0xff]  }
  0x13   : > { %834 = vmatpush3.bf16.msra.mxu0 %v902_v3  ;;  %886 = vmatpush3.bf16.msra.mxu1 %v902_v3  ;;  %v918_v15 = vld [vmem:[%s977_s24 + $0x58] sm:$0xff]   ;;  %v919_v17 = vld [vmem:[%s977_s24 + $0x60] sm:$0xff]   ;;  %v920_v19 = vld [vmem:[%s977_s24 + $0x68] sm:$0xff]  }
  0x14   : > { %835 = vmatprep.subr.bf16.mxu0 %v903_v5  ;;  %879 = vmatprep.subr.bf16.mxu1 %v903_v5  ;;  %v913_v20 = vld [vmem:[%s977_s24 + $0x30] sm:$0xff]   ;;  %v914_v22 = vld [vmem:[%s977_s24 + $0x38] sm:$0xff]  }
  0x15   : > { %v921_v21 = vld [vmem:[%s977_s24 + $0x70] sm:$0xff]   ;;  %v922_v23 = vld [vmem:[%s977_s24 + $0x78] sm:$0xff]  }
  0x17   : > { %836 = vmatpush3.bf16.msra.mxu0 %v903_v5  ;;  %887 = vmatpush3.bf16.msra.mxu1 %v903_v5 }
  0x18   : > { %837 = vmatprep.subr.bf16.mxu0 %v904_v6  ;;  %880 = vmatprep.subr.bf16.mxu1 %v904_v6 }
  0x1b   : > { %838 = vmatpush3.bf16.msra.mxu0 %v904_v6  ;;  %888 = vmatpush3.bf16.msra.mxu1 %v904_v6 }
  0x1c   : > { %839 = vmatprep.subr.bf16.mxu0 %v905_v8  ;;  %881 = vmatprep.subr.bf16.mxu1 %v905_v8 }
  0x1f   : > { %840 = vmatpush3.bf16.msra.mxu0 %v905_v8  ;;  %889 = vmatpush3.bf16.msra.mxu1 %v905_v8 }
  0x20   : > { %841 = vmatprep.subr.bf16.mxu0 %v906_v9  ;;  %882 = vmatprep.subr.bf16.mxu1 %v906_v9 }
  0x23   : > { %842 = vmatpush3.bf16.msra.mxu0 %v906_v9  ;;  %890 = vmatpush3.bf16.msra.mxu1 %v906_v9 }
  0x26   : > { %844 = vmatmul.mubr.bf16.vlgmr.msra.gmra.mrb[0].mxu0 %v908_v10  ;;  %860 = vmatmul.mubr.bf16.vlgmr.msra.gmra.mrb[0].mxu1 %v916_v11 }
  0x27   : > { %847 = vmatprep.mubr.bf16.mxu0 %v909_v12  ;;  %863 = vmatprep.mubr.bf16.mxu1 %v917_v13 }
  0x2e   : > { %848 = vmatmul.mubr.bf16.gmra.mrb[4].mxu0 %v910_v14  ;;  %864 = vmatmul.mubr.bf16.gmra.mrb[4].mxu1 %v918_v15 }
  0x2f   : > { %851 = vmatprep.mubr.bf16.mxu0 %v911_v16  ;;  %867 = vmatprep.mubr.bf16.mxu1 %v919_v17 }
  0x36   : > { %852 = vmatmul.mubr.bf16.gmra.mrb[8].mxu0 %v912_v18  ;;  %868 = vmatmul.mubr.bf16.gmra.mrb[8].mxu1 %v920_v19 }
  0x37   : > { %855 = vmatprep.mubr.bf16.mxu0 %v913_v20  ;;  %871 = vmatprep.mubr.bf16.mxu1 %v921_v21 }
  0x3e   : > { %856 = vmatmul.mubr.bf16.gmra.mrb[12].mxu0 %v914_v22  ;;  %872 = vmatmul.mubr.bf16.gmra.mrb[12].mxu1 %v922_v23 }
  0xf9   : > { %v845_v24 = vpop.f32.mrb[0].mxu0  ;;  %v1016_v25 = vpop.f32.mrb[0].mxu1 }
  0xfa   : > { %541 = vst [vmem:[%s1014_s11 + $0x10] sm:$0xff] %v845_v24  ;;  %v412_v26 = vpop.f32.mrb[1].mxu0  ;;  %557 = vst [vmem:[%s1014_s11 + $0x90] sm:$0xff] %v1016_v25  ;;  %v1021_v27 = vpop.f32.mrb[1].mxu1  ;;  %v610_v35 = vmul.f32 %v845_v24, %v845_v24 }
  0xfb   : > { %539 = vst [vmem:[%s1014_s11] sm:$0xff] %v412_v26  ;;  %v846_v28 = vpop.f32.mrb[2].mxu0  ;;  %555 = vst [vmem:[%s1014_s11 + $0x80] sm:$0xff] %v1021_v27  ;;  %v1026_v29 = vpop.f32.mrb[2].mxu1  ;;  %v608_v32 = vmul.f32 %v412_v26, %v412_v26 }
  0xfc   : > { %542 = vst [vmem:[%s1014_s11 + $0x18] sm:$0xff] %v846_v28  ;;  %v415_v30 = vpop.f32.mrb[3].mxu0  ;;  %558 = vst [vmem:[%s1014_s11 + $0x98] sm:$0xff] %v1026_v29  ;;  %v1031_v31 = vpop.f32.mrb[3].mxu1  ;;  %v611_v38 = vmul.f32 %v846_v28, %v846_v28 }
  0xfd   : > { %540 = vst [vmem:[%s1014_s11 + $0x8] sm:$0xff] %v415_v30  ;;  %v571_v33 = vadd.f32 %v415_v30, %v412_v26  ;;  %v609_v34 = vmul.f32 %v415_v30, %v415_v30  ;;  %556 = vst [vmem:[%s1014_s11 + $0x88] sm:$0xff] %v1031_v31 }
  0xff   : > { %v572_v36 = vadd.f32 %v845_v24, %v571_v33  ;;  %v640_v37 = vadd.f32 %v609_v34, %v608_v32 }
 0x101   : > { %v641_v39 = vadd.f32 %v640_v37, %v610_v35  ;;  %v849_v40 = vpop.f32.mrb[4].mxu0  ;;  %v573_v41 = vadd.f32 %v846_v28, %v572_v36  ;;  %v1036_v42 = vpop.f32.mrb[4].mxu1 }
 0x102   : > { %545 = vst [vmem:[%s1014_s11 + $0x30] sm:$0xff] %v849_v40  ;;  %v428_v43 = vpop.f32.mrb[5].mxu0  ;;  %561 = vst [vmem:[%s1014_s11 + $0xb0] sm:$0xff] %v1036_v42  ;;  %v1041_v44 = vpop.f32.mrb[5].mxu1  ;;  %v614_v55 = vmul.f32 %v849_v40, %v849_v40 }
 0x103   : > { %543 = vst [vmem:[%s1014_s11 + $0x20] sm:$0xff] %v428_v43  ;;  %v574_v45 = vadd.f32 %v573_v41, %v428_v43  ;;  %v612_v46 = vmul.f32 %v428_v43, %v428_v43  ;;  %v642_v47 = vadd.f32 %v641_v39, %v611_v38  ;;  %v850_v48 = vpop.f32.mrb[6].mxu0  ;;  %559 = vst [vmem:[%s1014_s11 + $0xa0] sm:$0xff] %v1041_v44  ;;  %v1046_v49 = vpop.f32.mrb[6].mxu1 }
 0x104   : > { %546 = vst [vmem:[%s1014_s11 + $0x38] sm:$0xff] %v850_v48  ;;  %v431_v50 = vpop.f32.mrb[7].mxu0  ;;  %562 = vst [vmem:[%s1014_s11 + $0xb8] sm:$0xff] %v1046_v49  ;;  %v1051_v51 = vpop.f32.mrb[7].mxu1  ;;  %v615_v58 = vmul.f32 %v850_v48, %v850_v48  ;;  %v624_v41 = vmul.f32 %v1021_v27, %v1021_v27 }
 0x105   : > { %v643_v52 = vadd.f32 %v642_v47, %v612_v46  ;;  %544 = vst [vmem:[%s1014_s11 + $0x28] sm:$0xff] %v431_v50  ;;  %v575_v53 = vadd.f32 %v574_v45, %v431_v50  ;;  %v613_v54 = vmul.f32 %v431_v50, %v431_v50  ;;  %560 = vst [vmem:[%s1014_s11 + $0xa8] sm:$0xff] %v1051_v51 }
 0x106   : > { %v626_v50 = vmul.f32 %v1016_v25, %v1016_v25 }
 0x107   : > { %v576_v56 = vadd.f32 %v849_v40, %v575_v53  ;;  %v644_v57 = vadd.f32 %v643_v52, %v613_v54  ;;  %v627_v54 = vmul.f32 %v1026_v29, %v1026_v29 }
 0x109   : > { %v645_v59 = vadd.f32 %v644_v57, %v614_v55  ;;  %v853_v60 = vpop.f32.mrb[8].mxu0  ;;  %v577_v61 = vadd.f32 %v850_v48, %v576_v56  ;;  %v1056_v62 = vpop.f32.mrb[8].mxu1  ;;  %v625_v48 = vmul.f32 %v1031_v31, %v1031_v31 }
 0x10a   : > { %549 = vst [vmem:[%s1014_s11 + $0x50] sm:$0xff] %v853_v60  ;;  %v444_v63 = vpop.f32.mrb[9].mxu0  ;;  %565 = vst [vmem:[%s1014_s11 + $0xd0] sm:$0xff] %v1056_v62  ;;  %v1061_v0 = vpop.f32.mrb[9].mxu1  ;;  %v618_v11 = vmul.f32 %v853_v60, %v853_v60 }
 0x10b   : > { %547 = vst [vmem:[%s1014_s11 + $0x40] sm:$0xff] %v444_v63  ;;  %v578_v1 = vadd.f32 %v577_v61, %v444_v63  ;;  %v616_v2 = vmul.f32 %v444_v63, %v444_v63  ;;  %v646_v3 = vadd.f32 %v645_v59, %v615_v58  ;;  %v854_v4 = vpop.f32.mrb[10].mxu0  ;;  %563 = vst [vmem:[%s1014_s11 + $0xc0] sm:$0xff] %v1061_v0  ;;  %v1066_v5 = vpop.f32.mrb[10].mxu1 }
 0x10c   : > { %550 = vst [vmem:[%s1014_s11 + $0x58] sm:$0xff] %v854_v4  ;;  %v447_v6 = vpop.f32.mrb[11].mxu0  ;;  %566 = vst [vmem:[%s1014_s11 + $0xd8] sm:$0xff] %v1066_v5  ;;  %v1071_v7 = vpop.f32.mrb[11].mxu1  ;;  %v619_v14 = vmul.f32 %v854_v4, %v854_v4 }
 0x10d   : > { %v647_v8 = vadd.f32 %v646_v3, %v616_v2  ;;  %548 = vst [vmem:[%s1014_s11 + $0x48] sm:$0xff] %v447_v6  ;;  %v579_v9 = vadd.f32 %v578_v1, %v447_v6  ;;  %v617_v10 = vmul.f32 %v447_v6, %v447_v6  ;;  %564 = vst [vmem:[%s1014_s11 + $0xc8] sm:$0xff] %v1071_v7 }
 0x10f   : > { %v580_v12 = vadd.f32 %v853_v60, %v579_v9  ;;  %v648_v13 = vadd.f32 %v647_v8, %v617_v10  ;;  %v629_v60 = vmul.f32 %v1051_v51, %v1051_v51  ;;  %v633_v8 = vmul.f32 %v1071_v7, %v1071_v7 }
 0x111   : > { %v649_v15 = vadd.f32 %v648_v13, %v618_v11  ;;  %v857_v16 = vpop.f32.mrb[12].mxu0  ;;  %v581_v17 = vadd.f32 %v854_v4, %v580_v12  ;;  %v1076_v18 = vpop.f32.mrb[12].mxu1 }
 0x112   : > { %553 = vst [vmem:[%s1014_s11 + $0x70] sm:$0xff] %v857_v16  ;;  %v460_v19 = vpop.f32.mrb[13].mxu0  ;;  %569 = vst [vmem:[%s1014_s11 + $0xf0] sm:$0xff] %v1076_v18  ;;  %v524_v20 = vpop.f32.mrb[13].mxu1  ;;  %v622_v35 = vmul.f32 %v857_v16, %v857_v16 }
 0x113   : > { %551 = vst [vmem:[%s1014_s11 + $0x60] sm:$0xff] %v460_v19  ;;  %v582_v21 = vadd.f32 %v581_v17, %v460_v19  ;;  %v620_v22 = vmul.f32 %v460_v19, %v460_v19  ;;  %v650_v23 = vadd.f32 %v649_v15, %v619_v14  ;;  %v858_v24 = vpop.f32.mrb[14].mxu0  ;;  %567 = vst [vmem:[%s1014_s11 + $0xe0] sm:$0xff] %v524_v20  ;;  %v874_v26 = vpop.f32.mrb[14].mxu1 }
 0x114   : > { %554 = vst [vmem:[%s1014_s11 + $0x78] sm:$0xff] %v858_v24  ;;  %v463_v28 = vpop.f32.mrb[15].mxu0  ;;  %570 = vst [vmem:[%s1014_s11 + $0xf8] sm:$0xff] %v874_v26  ;;  %v527_v30 = vpop.f32.mrb[15].mxu1  ;;  %v623_v38 = vmul.f32 %v858_v24, %v858_v24  ;;  %v636_v12 = vmul.f32 %v524_v20, %v524_v20  ;;  %v638_v17 = vmul.f32 %v1076_v18, %v1076_v18 }
 0x115   : > { %v651_v32 = vadd.f32 %v650_v23, %v620_v22  ;;  %552 = vst [vmem:[%s1014_s11 + $0x68] sm:$0xff] %v463_v28  ;;  %v583_v33 = vadd.f32 %v582_v21, %v463_v28  ;;  %v621_v34 = vmul.f32 %v463_v28, %v463_v28  ;;  %568 = vst [vmem:[%s1014_s11 + $0xe8] sm:$0xff] %v527_v30 }
 0x116   : > { %v639_v21 = vmul.f32 %v874_v26, %v874_v26 }
 0x117   : > { %v584_v36 = vadd.f32 %v857_v16, %v583_v33  ;;  %v652_v37 = vadd.f32 %v651_v32, %v621_v34 }
 0x119   : > { %v653_v39 = vadd.f32 %v652_v37, %v622_v35  ;;  %v585_v40 = vadd.f32 %v858_v24, %v584_v36 }
 0x11b   : > { %v586_v43 = vadd.f32 %v585_v40, %v1021_v27  ;;  %v654_v45 = vadd.f32 %v653_v39, %v623_v38  ;;  %v628_v27 = vmul.f32 %v1041_v44, %v1041_v44 }
 0x11d   : > { %v655_v46 = vadd.f32 %v654_v45, %v624_v41  ;;  %v587_v47 = vadd.f32 %v586_v43, %v1031_v31 }
 0x11f   : > { %v588_v52 = vadd.f32 %v1016_v25, %v587_v47  ;;  %v656_v53 = vadd.f32 %v655_v46, %v625_v48  ;;  %v630_v25 = vmul.f32 %v1036_v42, %v1036_v42 }
 0x121   : > { %v657_v55 = vadd.f32 %v656_v53, %v626_v50  ;;  %v589_v56 = vadd.f32 %v1026_v29, %v588_v52  ;;  %v631_v29 = vmul.f32 %v1046_v49, %v1046_v49 }
 0x123   : > { %v590_v57 = vadd.f32 %v589_v56, %v1041_v44  ;;  %v658_v58 = vadd.f32 %v657_v55, %v627_v54  ;;  %v632_v44 = vmul.f32 %v1061_v0, %v1061_v0 }
 0x125   : > { %v659_v59 = vadd.f32 %v658_v58, %v628_v27  ;;  %v591_v31 = vadd.f32 %v590_v57, %v1051_v51 }
 0x127   : > { %v592_v61 = vadd.f32 %v1036_v42, %v591_v31  ;;  %v660_v63 = vadd.f32 %v659_v59, %v629_v60  ;;  %v634_v42 = vmul.f32 %v1056_v62, %v1056_v62 }
 0x129   : > { %v661_v1 = vadd.f32 %v660_v63, %v630_v25  ;;  %v593_v2 = vadd.f32 %v1046_v49, %v592_v61  ;;  %v635_v49 = vmul.f32 %v1066_v5, %v1066_v5 }
 0x12b   : > { %v594_v3 = vadd.f32 %v593_v2, %v1061_v0  ;;  %v662_v4 = vadd.f32 %v661_v1, %v631_v29 }
 0x12d   : > { %v663_v6 = vadd.f32 %v662_v4, %v632_v44  ;;  %v595_v51 = vadd.f32 %v594_v3, %v1071_v7  ;;  %v637_v7 = vmul.f32 %v527_v30, %v527_v30 }
 0x12f   : > { %v596_v9 = vadd.f32 %v1056_v62, %v595_v51  ;;  %v664_v10 = vadd.f32 %v663_v6, %v633_v8 }
 0x131   : > { %v665_v11 = vadd.f32 %v664_v10, %v634_v42  ;;  %v597_v0 = vadd.f32 %v1066_v5, %v596_v9 }
 0x133   : > { %v598_v13 = vadd.f32 %v597_v0, %v524_v20  ;;  %v666_v14 = vadd.f32 %v665_v11, %v635_v49 }
 0x135   : > { %v667_v15 = vadd.f32 %v666_v14, %v636_v12  ;;  %v599_v16 = vadd.f32 %v598_v13, %v527_v30 }
 0x137   : > { %v600_v62 = vadd.f32 %v1076_v18, %v599_v16  ;;  %v668_v19 = vadd.f32 %v667_v15, %v637_v7 }
 0x139   : > { %v601_v22 = vadd.f32 %v874_v26, %v600_v62  ;;  %v669_v23 = vadd.f32 %v668_v19, %v638_v17 }
 0x13b   : > { %v602_v24 = vrot.slane %v601_v22, 4  ;;  %v670_v28 = vadd.f32 %v669_v23, %v639_v21 }
 0x13d   : > { %v603_v5 = vadd.f32 %v602_v24, %v601_v22  ;;  %v671_v32 = vrot.slane %v670_v28, 4 }
 0x13f   : > { %v604_v20 = vrot.slane %v603_v5, 2  ;;  %v672_v33 = vadd.f32 %v671_v32, %v670_v28 }
 0x141   : > { %v605_v34 = vadd.f32 %v604_v20, %v603_v5  ;;  %v673_v35 = vrot.slane %v672_v33, 2 }
 0x143   : > { %v606_v30 = vrot.slane %v605_v34, 1  ;;  %v674_v36 = vadd.f32 %v673_v35, %v672_v33 }
 0x145   : > { %v675_v37 = vrot.slane %v674_v36, 1  ;;  %v607_v18 = vadd.f32 %v606_v30, %v605_v34 }
 0x147   : > { %v676_v26 = vadd.f32 %v675_v37, %v674_v36 }
 0x149   : > { %v678_v38 = vsel %vm677_vm0, %v607_v18, %v676_v26 }
 0x14a   : > { %679 = vst [vmem:[%s184_s17] sm:$0x3] %v678_v38 }
 0x14b PF: > { %s14_s12 = sadd.s32 1, %s929_s12  }
 0x14c   : > { %p11_p5 = scmp.ge.s32.totalorder %s14_s12, 4  }
 0x14e   :  { %13 = sbr.rel (!%p11_p5) target bundleno = 1 (0x1), region = 70 }

</bundles_post_ra>
